<compile_context>
chip_gen: v7x
topology: tpu7x:2x2x1
jax: 0.10.0
libtpu: 0.0.40
codegen_flags: <defaults>
</compile_context>

<pallas_src>
import jax
import jax.numpy as jnp
from jax.experimental import pallas as pl
from jax.experimental.pallas import tpu as pltpu


def linear_kernel(params_ref, xt_ref, o_ref):
    # params_ref : SMEM (3,) f32  -> [w0, w1, b]
    # xt_ref     : VMEM (2, Nb)   -> features on sublanes, batch on lanes
    # o_ref      : VMEM (1, Nb)   -> lane-dense output
    w0 = params_ref[0]
    w1 = params_ref[1]
    b = params_ref[2]
    o_ref[...] = (xt_ref[0:1, :] * w0 + xt_ref[1:2, :] * w1 + b).astype(o_ref.dtype)


def simple_net_forward(x, weight, bias, *, block_n=8192, grid_threshold=1024):
    """x: (N, 2), weight: (1, 2) PyTorch layout, bias: (1,) -> (N, 1)."""
    n, in_f = x.shape
    assert in_f == 2 and weight.shape == (1, 2) and bias.shape == (1,)
    dtype = x.dtype

    # Scalars for SMEM: [w0, w1, b].
    params = jnp.concatenate(
        [weight.reshape(-1).astype(jnp.float32), bias.reshape(-1).astype(jnp.float32)]
    )

    # Layout plumbing: feature-major so batch sits on the 128-lane axis.
    xt = x.T  # (2, N)

    if n <= grid_threshold:
        # Tiny problem: whole arrays, no grid (launch/step overhead dominates).
        out_t = pl.pallas_call(
            linear_kernel,
            out_shape=jax.ShapeDtypeStruct((1, n), dtype),
            in_specs=[
                pl.BlockSpec(memory_space=pltpu.MemorySpace.SMEM),
                pl.BlockSpec(memory_space=pltpu.MemorySpace.VMEM),
            ],
            out_specs=pl.BlockSpec(memory_space=pltpu.MemorySpace.VMEM),
        )(params, xt)
    else:
        # Lane-dense tiled path: 1-D grid over the batch axis, double-buffered.
        n_blocks = pl.cdiv(n, block_n)
        n_pad = n_blocks * block_n
        if n_pad != n:
            xt = jnp.pad(xt, ((0, 0), (0, n_pad - n)))
        out_t = pl.pallas_call(
            linear_kernel,
            out_shape=jax.ShapeDtypeStruct((1, n_pad), dtype),
            grid=(n_blocks,),
            in_specs=[
                pl.BlockSpec(memory_space=pltpu.MemorySpace.SMEM),
                pl.BlockSpec((2, block_n), lambda i: (0, i)),
            ],
            out_specs=pl.BlockSpec((1, block_n), lambda i: (0, i)),
            compiler_params=pltpu.CompilerParams(
                dimension_semantics=("parallel",),
            ),
        )(params, xt)
        out_t = out_t[:, :n]

    return out_t.T  # (N, 1)


if __name__ == "__main__":
    key = jax.random.PRNGKey(0)
    kx, kw, kb, kx2 = jax.random.split(key, 4)

    # Deterministic parameter init mimicking nn.Linear's uniform(-1/sqrt(fan_in), ...)
    in_f, out_f = 2, 1
    bound = 1.0 / jnp.sqrt(jnp.float32(in_f))
    weight = jax.random.uniform(kw, (out_f, in_f), jnp.float32, -bound, bound)
    bias = jax.random.uniform(kb, (out_f,), jnp.float32, -bound, bound)

    # Small batch (N=8): whole-array no-grid path.
    x_small = jax.random.normal(kx, (8, in_f), dtype=jnp.float32)
    out_small = jax.block_until_ready(simple_net_forward(x_small, weight, bias))
    ref_small = x_small @ weight.T + bias
    assert out_small.shape == (8, 1)
    assert jnp.allclose(out_small, ref_small, atol=1e-5), "small-path mismatch"

    # Larger batch (N=1300, not a tile multiple): lane-dense tiled/padded grid path.
    x_big = jax.random.normal(kx2, (1300, in_f), dtype=jnp.float32)
    out_big = jax.block_until_ready(
        simple_net_forward(x_big, weight, bias, block_n=512, grid_threshold=256)
    )
    ref_big = x_big @ weight.T + bias
    assert out_big.shape == (1300, 1)
    assert jnp.allclose(out_big, ref_big, atol=1e-5), "tiled-path mismatch"

    print("KERNEL_OK")
</pallas_src>

<mosaic_0001>
module attributes {stable_mosaic.version = 11 : i64} {
  func.func @linear_kernel(%arg0: memref<3xf32, #tpu.memory_space<smem>>, %arg1: memref<2x8xf32, #tpu.memory_space<vmem>>, %arg2: memref<1x8xf32, #tpu.memory_space<vmem>>) attributes {dimension_semantics = [], scalar_prefetch = 0 : i64, scratch_operands = 0 : i64, tpu.core_type = #tpu.core_type<tc>} {
    %c0 = arith.constant 0 : index
    %0 = memref.load %arg0[%c0] : memref<3xf32, #tpu.memory_space<smem>>
    %c1 = arith.constant 1 : index
    %1 = memref.load %arg0[%c1] : memref<3xf32, #tpu.memory_space<smem>>
    %c2 = arith.constant 2 : index
    %2 = memref.load %arg0[%c2] : memref<3xf32, #tpu.memory_space<smem>>
    %c0_0 = arith.constant 0 : index
    %c0_1 = arith.constant 0 : index
    %3 = vector.load %arg1[%c0_0, %c0_1] : memref<2x8xf32, #tpu.memory_space<vmem>>, vector<1x8xf32>
    %4 = vector.broadcast %0 : f32 to vector<1x8xf32>
    %5 = arith.mulf %3, %4 : vector<1x8xf32>
    %c1_2 = arith.constant 1 : index
    %c0_3 = arith.constant 0 : index
    %6 = vector.load %arg1[%c1_2, %c0_3] : memref<2x8xf32, #tpu.memory_space<vmem>>, vector<1x8xf32>
    %7 = vector.broadcast %1 : f32 to vector<1x8xf32>
    %8 = arith.mulf %6, %7 : vector<1x8xf32>
    %9 = arith.addf %5, %8 : vector<1x8xf32>
    %10 = vector.broadcast %2 : f32 to vector<1x8xf32>
    %11 = arith.addf %9, %10 : vector<1x8xf32>
    %c0_4 = arith.constant 0 : index
    %c0_5 = arith.constant 0 : index
    %12 = vector.load %arg2[%c0_4, %c0_5] : memref<1x8xf32, #tpu.memory_space<vmem>>, vector<1x8xf32>
    tpu.vector_store %arg2[%c0_4, %c0_5], %11 {strides = array<i32>} : memref<1x8xf32, #tpu.memory_space<vmem>>, vector<1x8xf32>,
    return
  }
}

</mosaic_0001>

<bundles_post_ra>
// kernel: tpu_custom_call.1
= control target key start
LH: loop header
LB: loop body
LE: loop exit
PB: predicated region body
PF: predicated region fallthrough
CT: control target
= control target key end

     0   :  { %7 = vsyncpa [#allocation4], 0  ;;  %s139_s0 = inlined_call_operand.hbm [shape: f32[3], index: 0, kind: input, shape index: {}]   ;;  %s140_s1 = inlined_call_operand.vmem [shape: f32[2,8], index: 1, kind: input, shape index: {}]   ;;  %s141_s2 = inlined_call_operand.hbm [shape: f32[1,8], index: 2, kind: output, shape index: {}]  }
   0x1   :  { %8 = vsyncpa [#allocation3], 0  ;;  %s56_s11 = scalar_lea.hbm %s139_s0, 16 }
   0x2   :  { %p57_p0 = scmp.ne.s32.totalorder %s139_s0, %s56_s11  ;;  %p60_p1 = scmp.lt.u32.totalorder %s56_s11, %s139_s0 }
   0x4   :  { %p62_p2 = pnand %p60_p1, %p57_p0 }
   0x6   :  { %65 = shalt.err (!%p62_p2)
}
   0x7   :  { %s92_s16 = smov [#allocation2]  }
   0x8   :  { %16 = dma.hbm_to_smem %s139_s0, 16, %s92_s16, [#allocation4]  }
   0x9   :  { %88 = dma.done.wait [#allocation4], 16  }
   0xa   :  { %89 = vsyncadd [#allocation4], 4294967280 }
   0xb   :  { %22 = sfence }
   0xc   :  { %s23_s19 = sld [smem:[#allocation2]]  ;;  %s52_s20 = sld [smem:[#allocation2 + $0x1]]  ;;  %v26_v0 = vld [vmem:[%s140_s1] sm:$0x1]  ;;  %v29_v1 = vld [vmem:[%s140_s1 + $0x1] sm:$0x1] }
   0xd   :  { %s53_s21 = sld [smem:[#allocation2 + $0x2]]  ;;  %s93_s0 = smov [#allocation5]   ;;  %vm35_vm0 = vcmask 57344  }
   0xe   :  { %s43_s26 = sshll.u32 %s93_s0, 4  ;;  %s44_s26 = int_to_ptr.vmem [resolvable:$true] %s43_s26 }
   0xf   :  { %s66_s27 = scalar_lea.vmem %s44_s26, 16  ;;  %s70_s28 = scalar_lea.vmem %s44_s26, 32 }
  0x10   :  { %p67_p3 = scmp.ne.s32.totalorder %s44_s26, %s66_s27  ;;  %p71_p4 = scmp.lt.s32.totalorder %s44_s26, %s44_s26 }
  0x11   :  { %p72_p5 = scmp.lt.s32.totalorder %s70_s28, %s66_s27 }
  0x12   :  { %v27_v2 = vstv %s23_s19  ;;  %v30_v3 = vstv %s52_s20 }
  0x13   :  { %v28_v4 = vmul.f32 %v27_v2, %v26_v0  ;;  %v31_v5 = vmul.f32 %v30_v3, %v29_v1  ;;  %v33_v6 = vstv %s53_s21  ;;  %p73_p6 = por %p72_p5, %p71_p4 }
  0x15   :  { %v32_v7 = vadd.f32 %v31_v5, %v28_v4  ;;  %p74_p7 = pnand %p73_p6, %p67_p3 }
  0x17   :  { %v34_v8 = vadd.f32 %v33_v6, %v32_v7 }
  0x19   :  { %36 = vst.msk [vmem:[#allocation5] sm:$0x1] %vm35_vm0, %v34_v8 }
  0x1a   :  { %77 = shalt.err (!%p74_p7)
}
  0x1b   :  { %s78_s30 = scalar_lea.hbm %s141_s2, 16 }
  0x1c   :  { %p79_p8 = scmp.ne.s32.totalorder %s141_s2, %s78_s30  ;;  %p82_p9 = scmp.lt.u32.totalorder %s78_s30, %s141_s2 }
  0x1e   :  { %p84_p10 = pnand %p82_p9, %p79_p8 }
  0x20   :  { %87 = shalt.err (!%p84_p10)
}
  0x21   :  { %46 = dma.vmem_to_hbm [thread:$0]  %s44_s26, 16, %s141_s2, [#allocation3]  }
  0x22   :  { %90 = dma.done.wait [#allocation3], 16  }
  0x23   :  { %91 = vsyncadd [#allocation3], 4294967280 }
  0x24   :  { %50 = vsyncpa [#allocation3], 1 }
  0x25   :  { %51 = vsyncpa [#allocation4], 1 }

</bundles_post_ra>
